<compile_context>
chip_gen: v6e
topology: v6e:2x2x1
jax: 0.10.0
libtpu: 0.0.40
codegen_flags: <defaults>
</compile_context>

<pallas_src>
import jax
import jax.numpy as jnp
from jax.experimental import pallas as pl
from jax.experimental.pallas import tpu as pltpu


_LANE = 128
_FUSED_MAX_ROWS = 256   # per-table rows (pre-pad) below which the one-hot fused
                        # gather beats the XLA-gather path (one-hot cost ~ R * TB)
_FUSED_MAX_TB = 2048    # fused path is one-hot/VPU bound, not DMA bound, so a
                        # smaller tile keeps intermediates small at no cost


def _round_up(x, m):
    return (x + m - 1) // m * m


def _buffered_spec(shape, index_map, buffers=3):
    # Review item 6: 3-deep buffering on the two embedding streams; fall back to
    # the default double buffer if this jax version lacks pipeline_mode/Buffered.
    try:
        return pl.BlockSpec(shape, index_map, pipeline_mode=pl.Buffered(buffers))
    except Exception:  # pragma: no cover - graceful degradation only
        return pl.BlockSpec(shape, index_map)


def _affine_sigmoid_store(u_emb_f32, i_emb_f32, w_ref, b_ref, o_ref):
    # u_emb_f32 / i_emb_f32: (D, TB) f32, batch on lanes.
    prod = u_emb_f32 * i_emb_f32                         # VPU elementwise
    weighted = prod * w_ref[...]                         # (D, 1) lane-broadcast
    logits = jnp.sum(weighted, axis=0, keepdims=True)    # sublane reduce -> (1, TB)
    logits = logits + b_ref[0]                           # SMEM scalar bias
    o_ref[...] = jax.nn.sigmoid(logits).astype(o_ref.dtype)   # lane-dense store


def gmf_gathered_kernel(u_ref, i_ref, w_ref, b_ref, o_ref):
    # Large-table path: embeddings were gathered by XLA into (D, B) HBM arrays;
    # each step DMAs a (D, TB) tile in the table dtype and upcasts in-kernel.
    _affine_sigmoid_store(u_ref[...].astype(jnp.float32),
                          i_ref[...].astype(jnp.float32),
                          w_ref, b_ref, o_ref)


def gmf_fused_kernel(uidx_ref, iidx_ref, u_tab_ref, i_tab_ref, w_ref, b_ref, o_ref):
    # Small-table path: tables are VMEM-resident (D, R_pad); indices arrive as
    # (1, TB) int32 tiles.  Gather = one-hot matmul on the idle MXU (exact for
    # bf16 tables: one nonzero per column, f32 accumulation).
    tb = uidx_ref.shape[-1]

    def gather_onehot(tab_ref, idx):
        r = tab_ref.shape[-1]
        rows = jax.lax.broadcasted_iota(jnp.int32, (r, tb), 0)
        one_hot = (rows == idx).astype(tab_ref.dtype)            # (R_pad, TB)
        return jnp.dot(tab_ref[...], one_hot,
                       preferred_element_type=jnp.float32)       # (D, TB) f32

    u_emb = gather_onehot(u_tab_ref, uidx_ref[...])
    i_emb = gather_onehot(i_tab_ref, iidx_ref[...])
    _affine_sigmoid_store(u_emb, i_emb, w_ref, b_ref, o_ref)


def gmf_forward(user_indices, item_indices, user_table_t, item_table_t,
                weight, bias, *, tb=8192, fuse_gather=None):
    """GMF forward.

    user_table_t / item_table_t are stored transposed, shape (latent_dim, num_rows)
    (review item 3: the gather then lands directly in the kernel's (D, B) layout),
    typically in bf16 (review item 4).  weight is the Linear(D, 1) weight of shape
    (1, D) or (D,); bias has shape (1,).  Returns sigmoid ratings of shape (B, 1).
    """
    B = int(user_indices.shape[0])
    D = int(user_table_t.shape[0])
    num_users = int(user_table_t.shape[1])
    num_items = int(item_table_t.shape[1])
    assert int(item_table_t.shape[0]) == D

    if fuse_gather is None:
        fuse_gather = max(num_users, num_items) <= _FUSED_MAX_ROWS

    # ---- batch tiling --------------------------------------------------------
    if fuse_gather:
        tb = min(tb, _FUSED_MAX_TB)
    b_ceil = _round_up(B, _LANE)
    tb = max(_LANE, min(_round_up(tb, _LANE), b_ceil))
    # Review item 2 (v7x megacore): keep >=2 grid steps on the "parallel" batch
    # axis so both TensorCores get work; harmless on 1-TC v5e/v6e.
    tb = min(tb, _round_up(-(-b_ceil // 2), _LANE))
    b_pad = _round_up(B, tb)

    pad = b_pad - B
    user_indices = user_indices.astype(jnp.int32)
    item_indices = item_indices.astype(jnp.int32)
    if pad:
        zpad = jnp.zeros((pad,), dtype=jnp.int32)
        user_indices = jnp.concatenate([user_indices, zpad])
        item_indices = jnp.concatenate([item_indices, zpad])

    w_col = jnp.asarray(weight, jnp.float32).reshape(D, 1)   # Linear(D -> 1) weight
    b_sc = jnp.asarray(bias, jnp.float32).reshape(1)         # Linear bias (SMEM)

    compiler_params = pltpu.CompilerParams(
        # "parallel" batch axis -> sharded across v7x's 2 TensorCores.
        # VMEM use (see header accounting) is well under every generation's
        # scoped default, so no vmem_limit_bytes override is needed.
        dimension_semantics=("parallel",))

    if fuse_gather:
        # ---- fused-gather path: tables VMEM-resident, one-hot gather in-kernel.
        r_u = _round_up(num_users, _LANE)
        r_i = _round_up(num_items, _LANE)
        u_tab = jnp.pad(user_table_t, ((0, 0), (0, r_u - num_users)))
        i_tab = jnp.pad(item_table_t, ((0, 0), (0, r_i - num_items)))
        uidx = user_indices.reshape(1, b_pad)
        iidx = item_indices.reshape(1, b_pad)

        out = pl.pallas_call(
            gmf_fused_kernel,
            out_shape=jax.ShapeDtypeStruct((1, b_pad), jnp.float32),
            grid_spec=pltpu.PrefetchScalarGridSpec(
                num_scalar_prefetch=0,
                grid=(b_pad // tb,),
                in_specs=[
                    pl.BlockSpec((1, tb), lambda t: (0, t)),     # user index tile
                    pl.BlockSpec((1, tb), lambda t: (0, t)),     # item index tile
                    pl.BlockSpec((D, r_u), lambda t: (0, 0)),    # user table (resident)
                    pl.BlockSpec((D, r_i), lambda t: (0, 0)),    # item table (resident)
                    pl.BlockSpec((D, 1), lambda t: (0, 0)),      # weight (resident)
                    pl.BlockSpec(memory_space=pltpu.MemorySpace.SMEM),  # bias scalar
                ],
                out_specs=pl.BlockSpec((1, tb), lambda t: (0, t)),      # lane-dense out
            ),
            compiler_params=compiler_params,
        )(uidx, iidx, u_tab, i_tab, w_col, b_sc)
    else:
        # ---- large-table path: XLA gather along the last axis of the transposed
        # tables -> (D, b_pad) directly in the kernel's layout (no per-batch
        # transpose pass); tiles DMA'd in the table dtype (bf16 halves traffic).
        u_emb_t = jnp.take(user_table_t, user_indices, axis=1)
        i_emb_t = jnp.take(item_table_t, item_indices, axis=1)

        out = pl.pallas_call(
            gmf_gathered_kernel,
            out_shape=jax.ShapeDtypeStruct((1, b_pad), jnp.float32),
            grid_spec=pltpu.PrefetchScalarGridSpec(
                num_scalar_prefetch=0,
                grid=(b_pad // tb,),
                in_specs=[
                    _buffered_spec((D, tb), lambda t: (0, t)),   # user embedding tile
                    _buffered_spec((D, tb), lambda t: (0, t)),   # item embedding tile
                    pl.BlockSpec((D, 1), lambda t: (0, 0)),      # weight (resident)
                    pl.BlockSpec(memory_space=pltpu.MemorySpace.SMEM),  # bias scalar
                ],
                out_specs=pl.BlockSpec((1, tb), lambda t: (0, t)),      # lane-dense out
            ),
            compiler_params=compiler_params,
        )(u_emb_t, i_emb_t, w_col, b_sc)

    return out[0, :B].reshape(B, 1)


def gmf_reference(user_indices, item_indices, user_table_t, item_table_t, weight, bias):
    u = user_table_t[:, user_indices].astype(jnp.float32)      # (D, B)
    it = item_table_t[:, item_indices].astype(jnp.float32)     # (D, B)
    w = jnp.asarray(weight, jnp.float32).reshape(-1, 1)        # (D, 1)
    logits = jnp.sum(u * it * w, axis=0) + jnp.asarray(bias, jnp.float32).reshape(())
    return jax.nn.sigmoid(logits).reshape(-1, 1)


if __name__ == "__main__":
    num_users, num_items, latent_dim = 16, 24, 32

    key = jax.random.PRNGKey(0)
    k_u, k_i, k_w, k_b = jax.random.split(key, 4)

    # Parameter init matching torch defaults in spirit:
    #   nn.Embedding -> N(0, 1); nn.Linear -> U(-1/sqrt(D), 1/sqrt(D)).
    # Tables are stored bf16 (review item 4) and transposed (D, num_rows)
    # (review item 3) — a one-time parameter-storage choice, not per-batch work.
    user_table_t = jax.random.normal(
        k_u, (num_users, latent_dim), dtype=jnp.float32).astype(jnp.bfloat16).T
    item_table_t = jax.random.normal(
        k_i, (num_items, latent_dim), dtype=jnp.float32).astype(jnp.bfloat16).T
    bound = 1.0 / (latent_dim ** 0.5)
    weight = jax.random.uniform(k_w, (1, latent_dim), minval=-bound, maxval=bound,
                                dtype=jnp.float32)
    bias = jax.random.uniform(k_b, (1,), minval=-bound, maxval=bound,
                              dtype=jnp.float32)

    ok = True
    # batch=8: single-tile fused path; batch=200: padded multi-step fused path;
    # batch=200 w/ fuse_gather=False: exercises the large-table (XLA gather) path.
    for batch, fuse in ((8, None), (200, None), (200, False)):
        kb = jax.random.fold_in(key, 2 * batch + int(fuse is False))
        k_ui, k_ii = jax.random.split(kb)
        user_indices = jax.random.randint(k_ui, (batch,), 0, num_users, dtype=jnp.int32)
        item_indices = jax.random.randint(k_ii, (batch,), 0, num_items, dtype=jnp.int32)

        out = gmf_forward(user_indices, item_indices, user_table_t, item_table_t,
                          weight, bias, fuse_gather=fuse)
        out = jax.block_until_ready(out)

        ref = gmf_reference(user_indices, item_indices, user_table_t, item_table_t,
                            weight, bias)
        assert out.shape == (batch, 1)
        ok = ok and bool(jnp.allclose(out, ref, atol=1e-5, rtol=1e-5))

    assert ok
    print("KERNEL_OK")
</pallas_src>

<mosaic_0001>
module attributes {stable_mosaic.version = 11 : i64} {
  func.func @gmf_fused_kernel(%arg0: i32, %arg1: memref<1x128xi32, #tpu.memory_space<vmem>>, %arg2: memref<1x128xi32, #tpu.memory_space<vmem>>, %arg3: memref<32x128xbf16, #tpu.memory_space<vmem>>, %arg4: memref<32x128xbf16, #tpu.memory_space<vmem>>, %arg5: memref<32x1xf32, #tpu.memory_space<vmem>>, %arg6: memref<1xf32, #tpu.memory_space<smem>>, %arg7: memref<1x128xf32, #tpu.memory_space<vmem>>) attributes {dimension_semantics = [#tpu.dimension_semantics<parallel>], iteration_bounds = array<i64: 1>, scalar_prefetch = 0 : i64, scratch_operands = 0 : i64, tpu.core_type = #tpu.core_type<tc>, window_params = [{transform_indices = @transform_0, window_bounds = array<i64: 1, 128>}, {transform_indices = @transform_1, window_bounds = array<i64: 1, 128>}, {pipeline_mode = #tpu.pipeline_mode<synchronous>, transform_indices = @transform_2, window_bounds = array<i64: 32, 128>}, {pipeline_mode = #tpu.pipeline_mode<synchronous>, transform_indices = @transform_3, window_bounds = array<i64: 32, 128>}, {pipeline_mode = #tpu.pipeline_mode<synchronous>, transform_indices = @transform_4, window_bounds = array<i64: 32, 1>}, {transform_indices = @transform_5, window_bounds = array<i64: 1>}, {transform_indices = @transform_6, window_bounds = array<i64: 1, 128>}]} {
    %c0 = arith.constant 0 : index
    %c0_0 = arith.constant 0 : index
    %0 = vector.load %arg1[%c0, %c0_0] : memref<1x128xi32, #tpu.memory_space<vmem>>, vector<1x128xi32>
    %1 = tpu.iota {dimensions = array<i32: 0>} : vector<128x128xi32>
    %2 = vector.broadcast %0 : vector<1x128xi32> to vector<128x128xi32>
    %3 = arith.cmpi eq, %1, %2 : vector<128x128xi32>
    %4 = arith.extui %3 : vector<128x128xi1> to vector<128x128xi32>
    %5 = arith.sitofp %4 : vector<128x128xi32> to vector<128x128xf32>
    %6 = arith.truncf %5 : vector<128x128xf32> to vector<128x128xbf16>
    %c0_1 = arith.constant 0 : index
    %c0_2 = arith.constant 0 : index
    %7 = vector.load %arg3[%c0_1, %c0_2] : memref<32x128xbf16, #tpu.memory_space<vmem>>, vector<32x128xbf16>
    %cst = arith.constant dense<0.000000e+00> : vector<32x128xf32>
    %8 = tpu.matmul %7, %6, %cst {dimension_numbers = #tpu.dot_dimension_numbers<[1], [0], [0], [1], [0, 0, 1, 1], [], []>} : vector<32x128xbf16>, vector<128x128xbf16>, vector<32x128xf32> -> vector<32x128xf32>
    %c0_3 = arith.constant 0 : index
    %c0_4 = arith.constant 0 : index
    %9 = vector.load %arg2[%c0_3, %c0_4] : memref<1x128xi32, #tpu.memory_space<vmem>>, vector<1x128xi32>
    %10 = tpu.iota {dimensions = array<i32: 0>} : vector<128x128xi32>
    %11 = vector.broadcast %9 : vector<1x128xi32> to vector<128x128xi32>
    %12 = arith.cmpi eq, %10, %11 : vector<128x128xi32>
    %13 = arith.extui %12 : vector<128x128xi1> to vector<128x128xi32>
    %14 = arith.sitofp %13 : vector<128x128xi32> to vector<128x128xf32>
    %15 = arith.truncf %14 : vector<128x128xf32> to vector<128x128xbf16>
    %c0_5 = arith.constant 0 : index
    %c0_6 = arith.constant 0 : index
    %16 = vector.load %arg4[%c0_5, %c0_6] : memref<32x128xbf16, #tpu.memory_space<vmem>>, vector<32x128xbf16>
    %cst_7 = arith.constant dense<0.000000e+00> : vector<32x128xf32>
    %17 = tpu.matmul %16, %15, %cst_7 {dimension_numbers = #tpu.dot_dimension_numbers<[1], [0], [0], [1], [0, 0, 1, 1], [], []>} : vector<32x128xbf16>, vector<128x128xbf16>, vector<32x128xf32> -> vector<32x128xf32>
    %18 = arith.mulf %8, %17 : vector<32x128xf32>
    %c0_8 = arith.constant 0 : index
    %c0_9 = arith.constant 0 : index
    %19 = vector.load %arg5[%c0_8, %c0_9] : memref<32x1xf32, #tpu.memory_space<vmem>>, vector<32x1xf32>
    %20 = vector.broadcast %19 : vector<32x1xf32> to vector<32x128xf32>
    %21 = arith.mulf %18, %20 : vector<32x128xf32>
    %cst_10 = arith.constant dense<0.000000e+00> : vector<128xf32>
    %22 = vector.multi_reduction <add>, %21, %cst_10 [0] : vector<32x128xf32> to vector<128xf32>
    %23 = vector.shape_cast %22 : vector<128xf32> to vector<1x128xf32>
    %c0_11 = arith.constant 0 : index
    %24 = memref.load %arg6[%c0_11] : memref<1xf32, #tpu.memory_space<smem>>
    %25 = vector.broadcast %24 : f32 to vector<1x128xf32>
    %26 = arith.addf %23, %25 : vector<1x128xf32>
    %27 = arith.negf %26 : vector<1x128xf32>
    %28 = math.exp %27 : vector<1x128xf32>
    %cst_12 = arith.constant 1.000000e+00 : f32
    %29 = vector.broadcast %cst_12 : f32 to vector<1x128xf32>
    %30 = arith.addf %29, %28 : vector<1x128xf32>
    %31 = arith.divf %29, %30 : vector<1x128xf32>
    %c0_13 = arith.constant 0 : index
    %c0_14 = arith.constant 0 : index
    %32 = vector.load %arg7[%c0_13, %c0_14] : memref<1x128xf32, #tpu.memory_space<vmem>>, vector<1x128xf32>
    tpu.vector_store %arg7[%c0_13, %c0_14], %31 {strides = array<i32>} : memref<1x128xf32, #tpu.memory_space<vmem>>, vector<1x128xf32>,
    return
  }
  func.func @transform_0(%arg0: i32) -> (i32, i32) {
    %c0_i32 = arith.constant 0 : i32
    %c0_i32_0 = arith.constant 0 : i32
    return %c0_i32, %arg0 : i32, i32
  }
  func.func @transform_1(%arg0: i32) -> (i32, i32) {
    %c0_i32 = arith.constant 0 : i32
    %c0_i32_0 = arith.constant 0 : i32
    return %c0_i32, %arg0 : i32, i32
  }
  func.func @transform_2(%arg0: i32) -> (i32, i32) {
    %c0_i32 = arith.constant 0 : i32
    %c0_i32_0 = arith.constant 0 : i32
    %c0_i32_1 = arith.constant 0 : i32
    return %c0_i32, %c0_i32_0 : i32, i32
  }
  func.func @transform_3(%arg0: i32) -> (i32, i32) {
    %c0_i32 = arith.constant 0 : i32
    %c0_i32_0 = arith.constant 0 : i32
    %c0_i32_1 = arith.constant 0 : i32
    return %c0_i32, %c0_i32_0 : i32, i32
  }
  func.func @transform_4(%arg0: i32) -> (i32, i32) {
    %c0_i32 = arith.constant 0 : i32
    %c0_i32_0 = arith.constant 0 : i32
    %c0_i32_1 = arith.constant 0 : i32
    return %c0_i32, %c0_i32_0 : i32, i32
  }
  func.func @transform_5(%arg0: i32) -> i32 {
    %c0_i32 = arith.constant 0 : i32
    %c0_i32_0 = arith.constant 0 : i32
    return %c0_i32 : i32
  }
  func.func @transform_6(%arg0: i32) -> (i32, i32) {
    %c0_i32 = arith.constant 0 : i32
    %c0_i32_0 = arith.constant 0 : i32
    return %c0_i32, %arg0 : i32, i32
  }
}

</mosaic_0001>

<bundles_post_ra>
// kernel: tpu_custom_call.1
= control target key start
LH: loop header
LB: loop body
LE: loop exit
PB: predicated region body
PF: predicated region fallthrough
CT: control target
= control target key end

     0   :  { %v27_v0 = vlaneseq  ;;  %v526_v5 = vmov 0   ;;  %v527_v14 = vmov 1.0|1.0   ;;  %s767_s0 = inlined_call_operand.vmem [shape: s32[1,128], index: 0, kind: input, shape index: {}]   ;;  %s768_s1 = inlined_call_operand.vmem [shape: s32[1,128], index: 1, kind: input, shape index: {}]   ;;  %s769_s2 = inlined_call_operand.vmem [shape: bf16[32,128], index: 2, kind: input, shape index: {}]   ;;  %s770_s3 = inlined_call_operand.vmem [shape: bf16[32,128], index: 3, kind: input, shape index: {}]   ;;  %s771_s4 = inlined_call_operand.vmem [shape: f32[32,1], index: 4, kind: input, shape index: {}]   ;;  %s772_s5 = inlined_call_operand.<no memory space> [shape: f32[1], index: 5, kind: input, shape index: {}]   ;;  %s773_s6 = inlined_call_operand.hbm [shape: f32[1,128], index: 6, kind: output, shape index: {}]  }
   0x1   :  { %v567_v1 = vld [vmem:[%s767_s0] ss:$0 sm:$0xff]  ;;  %494 = vset.pattern.permute.xlu0 %v526_v5  ;;  %495 = vset.pattern.permute.xlu1 %v526_v5  ;;  %v301_v17 = vld [vmem:[%s771_s4 + $0x10] sm:$0xff]  ;;  %v300_v19 = vld [vmem:[%s771_s4 + $0x8] sm:$0xff] }
   0x2   :  { %v496_v2 = vld [vmem:[%s769_s2] sm:$0xff]   ;;  %v572_v3 = vshrl.u32 %v27_v0, 7  ;;  %315 = vperm.xlu1 %495, %v301_v17   ;;  %v302_v24 = vld [vmem:[%s771_s4 + $0x18] sm:$0xff] }
   0x3   :  { %v497_v4 = vld [vmem:[%s770_s3] sm:$0xff]   ;;  %467 = vmatprep.mubr.bf16.mxu0 %v496_v2 }
   0x4   :  { %v580_v6 = vld [vmem:[%s768_s1] ss:$0 sm:$0xff]  ;;  %v42_v7 = vadd.s32 112, %v572_v3  ;;  %v43_v8 = vadd.s32 120, %v572_v3  ;;  %v40_v9 = vadd.s32 96, %v572_v3  ;;  %v41_v10 = vadd.s32 104, %v572_v3  ;;  %487 = vmatprep.mubr.bf16.mxu1 %v497_v4 }
   0x5   :  { %v38_v11 = vadd.s32 80, %v572_v3  ;;  %v39_v12 = vadd.s32 88, %v572_v3  ;;  %v299_v13 = vld [vmem:[%s771_s4] sm:$0xff]  ;;  %v36_v15 = vadd.s32 64, %v572_v3  ;;  %v37_v16 = vadd.s32 72, %v572_v3 }
   0x6   :  { %vm62_vm0 = vcmp.eq.s32.totalorder %v42_v7, %v567_v1  ;;  %vm63_vm1 = vcmp.eq.s32.totalorder %v43_v8, %v567_v1  ;;  %vm188_vm2 = vcmp.eq.s32.totalorder %v42_v7, %v580_v6  ;;  %vm189_vm3 = vcmp.eq.s32.totalorder %v43_v8, %v580_v6  ;;  %305 = vperm.xlu0 %494, %v299_v13  }
   0x7   :  { %vm379_vm4 = vmpackc.low %vm63_vm1, %vm62_vm0  ;;  %vm60_vm5 = vcmp.eq.s32.totalorder %v40_v9, %v567_v1  ;;  %vm61_vm6 = vcmp.eq.s32.totalorder %v41_v10, %v567_v1  ;;  %vm186_vm7 = vcmp.eq.s32.totalorder %v40_v9, %v580_v6  ;;  %vm187_vm8 = vcmp.eq.s32.totalorder %v41_v10, %v580_v6  ;;  %320 = vperm.xlu1 %495, %v302_v24  }
   0x8   :  { %451 = vmatprep.subr.msk.bf16.mxu0 %vm379_vm4, %v527_v14  ;;  %vm414_vm9 = vmpackc.low %vm189_vm3, %vm188_vm2  ;;  %vm58_vm10 = vcmp.eq.s32.totalorder %v38_v11, %v567_v1  ;;  %vm59_vm11 = vcmp.eq.s32.totalorder %v39_v12, %v567_v1  ;;  %vm184_vm13 = vcmp.eq.s32.totalorder %v38_v11, %v580_v6  ;;  %vm185_vm14 = vcmp.eq.s32.totalorder %v39_v12, %v580_v6 }
   0x9   :  { %471 = vmatprep.subr.msk.bf16.mxu1 %vm414_vm9, %v527_v14  ;;  %452 = vmatpush3.bf16.msk.msra.mxu0 %vm379_vm4, %v527_v14  ;;  %vm611_vm12 = vmpackc.low %vm61_vm6, %vm60_vm5  ;;  %vm56_vm2 = vcmp.eq.s32.totalorder %v36_v15, %v567_v1  ;;  %vm57_vm3 = vcmp.eq.s32.totalorder %v37_v16, %v567_v1  ;;  %v34_v22 = vadd.s32 48, %v572_v3  ;;  %v35_v23 = vadd.s32 56, %v572_v3 }
   0xa   :  { %472 = vmatpush3.bf16.msk.msra.mxu1 %vm414_vm9, %v527_v14  ;;  %453 = vmatprep.subr.msk.bf16.mxu0 %vm611_vm12, %v527_v14  ;;  %vm416_vm15 = vmpackc.low %vm187_vm8, %vm186_vm7  ;;  %vm182_vm4 = vcmp.eq.s32.totalorder %v36_v15, %v580_v6  ;;  %vm183_vm5 = vcmp.eq.s32.totalorder %v37_v16, %v580_v6  ;;  %v32_v26 = vadd.s32 32, %v572_v3  ;;  %v33_v27 = vadd.s32 40, %v572_v3 }
   0xb   :  { %473 = vmatprep.subr.msk.bf16.mxu1 %vm416_vm15, %v527_v14  ;;  %vm631_vm0 = vmpackc.low %vm59_vm11, %vm58_vm10  ;;  %310 = vperm.xlu0 %494, %v300_v19   ;;  %vm54_vm8 = vcmp.eq.s32.totalorder %v34_v22, %v567_v1  ;;  %vm55_vm9 = vcmp.eq.s32.totalorder %v35_v23, %v567_v1  ;;  %vm180_vm10 = vcmp.eq.s32.totalorder %v34_v22, %v580_v6  ;;  %v30_v31 = vadd.s32 16, %v572_v3 }
   0xc   :  { %vm635_vm1 = vmpackc.low %vm185_vm14, %vm184_vm13  ;;  %vm181_vm11 = vcmp.eq.s32.totalorder %v35_v23, %v580_v6  ;;  %vm52_vm13 = vcmp.eq.s32.totalorder %v32_v26, %v567_v1  ;;  %vm53_vm14 = vcmp.eq.s32.totalorder %v33_v27, %v567_v1  ;;  %v31_v32 = vadd.s32 24, %v572_v3 }
   0xd   :  { %454 = vmatpush3.bf16.msk.msra.mxu0 %vm611_vm12, %v527_v14  ;;  %vm658_vm6 = vmpackc.low %vm57_vm3, %vm56_vm2 }
   0xe   :  { %474 = vmatpush3.bf16.msk.msra.mxu1 %vm416_vm15, %v527_v14  ;;  %455 = vmatprep.subr.msk.bf16.mxu0 %vm631_vm0, %v527_v14  ;;  %vm664_vm7 = vmpackc.low %vm183_vm5, %vm182_vm4 }
   0xf   :  { %475 = vmatprep.subr.msk.bf16.mxu1 %vm635_vm1, %v527_v14  ;;  %vm684_vm12 = vmpackc.low %vm55_vm9, %vm54_vm8 }
  0x10   :  { %vm690_vm15 = vmpackc.low %vm181_vm11, %vm180_vm10 }
  0x11   :  { %456 = vmatpush3.bf16.msk.msra.mxu0 %vm631_vm0, %v527_v14  ;;  %vm178_vm0 = vcmp.eq.s32.totalorder %v32_v26, %v580_v6  ;;  %vm707_vm2 = vmpackc.low %vm53_vm14, %vm52_vm13 }
  0x12   :  { %476 = vmatpush3.bf16.msk.msra.mxu1 %vm635_vm1, %v527_v14  ;;  %457 = vmatprep.subr.msk.bf16.mxu0 %vm658_vm6, %v527_v14  ;;  %vm179_vm1 = vcmp.eq.s32.totalorder %v33_v27, %v580_v6 }
  0x13   :  { %477 = vmatprep.subr.msk.bf16.mxu1 %vm664_vm7, %v527_v14 }
  0x15   :  { %458 = vmatpush3.bf16.msk.msra.mxu0 %vm658_vm6, %v527_v14 }
  0x16   :  { %478 = vmatpush3.bf16.msk.msra.mxu1 %vm664_vm7, %v527_v14  ;;  %459 = vmatprep.subr.msk.bf16.mxu0 %vm684_vm12, %v527_v14 }
  0x17   :  { %479 = vmatprep.subr.msk.bf16.mxu1 %vm690_vm15, %v527_v14 }
  0x18   :  { %12 = vsyncpa [#allocation4], 0  ;;  %vm50_vm4 = vcmp.eq.s32.totalorder %v30_v31, %v567_v1  ;;  %vm51_vm5 = vcmp.eq.s32.totalorder %v31_v32, %v567_v1  ;;  %v29_v35 = vadd.s32 8, %v572_v3  ;;  %vm176_vm6 = vcmp.eq.s32.totalorder %v30_v31, %v580_v6  ;;  %v498_v36 = vld [vmem:[%s769_s2 + $0x8] sm:$0xff]   ;;  %s528_s14 = smov [#allocation3]  }
  0x19   :  { %vm714_vm3 = vmpackc.low %vm179_vm1, %vm178_vm0  ;;  %460 = vmatpush3.bf16.msk.msra.mxu0 %vm684_vm12, %v527_v14  ;;  %vm177_vm7 = vcmp.eq.s32.totalorder %v31_v32, %v580_v6  ;;  %vm48_vm10 = vcmp.eq.s32.totalorder %v572_v3, %v567_v1  ;;  %vm174_vm12 = vcmp.eq.s32.totalorder %v572_v3, %v580_v6  ;;  %v499_v37 = vld [vmem:[%s770_s3 + $0x8] sm:$0xff]   ;;  %v337_v2 = vstv %s772_s5  ;;  %s352_s15 = sshll.u32 %s528_s14, 4  ;;  %s353_s15 = int_to_ptr.vmem [resolvable:$true] %s352_s15 }
  0x1a   :  { %480 = vmatpush3.bf16.msk.msra.mxu1 %vm690_vm15, %v527_v14  ;;  %461 = vmatprep.subr.msk.bf16.mxu0 %vm707_vm2, %v527_v14  ;;  %vm391_vm8 = vmpackc.low %vm51_vm5, %vm50_vm4  ;;  %vm49_vm11 = vcmp.eq.s32.totalorder %v29_v35, %v567_v1  ;;  %vm175_vm13 = vcmp.eq.s32.totalorder %v29_v35, %v580_v6  ;;  %s504_s16 = scalar_lea.vmem %s353_s15, 16  ;;  %s508_s17 = scalar_lea.vmem %s353_s15, 32 }
  0x1b   :  { %481 = vmatprep.subr.msk.bf16.mxu1 %vm714_vm3, %v527_v14  ;;  %vm426_vm9 = vmpackc.low %vm177_vm7, %vm176_vm6  ;;  %p505_p0 = scmp.ne.s32.totalorder %s353_s15, %s504_s16  ;;  %p509_p1 = scmp.lt.s32.totalorder %s353_s15, %s353_s15 }
  0x1c   :  { %vm393_vm14 = vmpackc.low %vm49_vm11, %vm48_vm10  ;;  %p510_p2 = scmp.lt.s32.totalorder %s508_s17, %s504_s16 }
  0x1d   :  { %462 = vmatpush3.bf16.msk.msra.mxu0 %vm707_vm2, %v527_v14  ;;  %vm428_vm15 = vmpackc.low %vm175_vm13, %vm174_vm12 }
  0x1e   :  { %482 = vmatpush3.bf16.msk.msra.mxu1 %vm714_vm3, %v527_v14  ;;  %463 = vmatprep.subr.msk.bf16.mxu0 %vm391_vm8, %v527_v14  ;;  %p511_p3 = por %p510_p2, %p509_p1 }
  0x1f   :  { %483 = vmatprep.subr.msk.bf16.mxu1 %vm426_vm9, %v527_v14 }
  0x20   :  { %p512_p4 = pnand %p511_p3, %p505_p0 }
  0x21   :  { %464 = vmatpush3.bf16.msk.msra.mxu0 %vm391_vm8, %v527_v14 }
  0x22   :  { %484 = vmatpush3.bf16.msk.msra.mxu1 %vm426_vm9, %v527_v14  ;;  %465 = vmatprep.subr.msk.bf16.mxu0 %vm393_vm14, %v527_v14 }
  0x23   :  { %485 = vmatprep.subr.msk.bf16.mxu1 %vm428_vm15, %v527_v14 }
  0x25   :  { %466 = vmatpush3.bf16.msk.msra.mxu0 %vm393_vm14, %v527_v14 }
  0x26   :  { %486 = vmatpush3.bf16.msk.msra.mxu1 %vm428_vm15, %v527_v14 }
  0x28   :  { %468 = vmatmul.mubr.bf16.vlgmr.msra.gmra.mxu0 %v498_v36 }
  0x29   :  { %488 = vmatmul.mubr.bf16.vlgmr.msra.gmra.mxu1 %v499_v37 }
  0x7d   :  { %v316_v44 = vpop.permute.xlu1 %315 }
  0x81   :  { %v306_v41 = vpop.permute.xlu0 %305 }
  0x82   :  { %v321_v55 = vpop.permute.xlu1 %320 }
  0x86   :  { %v311_v51 = vpop.permute.xlu0 %310 }
  0xe8   :  { %v469_v38 = vpop.f32.mrf.mxu0 }
  0xe9   :  { %v489_v39 = vpop.f32.mrf.mxu1 }
  0xea   :  { %v154_v40 = vpop.f32.mrf.mxu0  ;;  %v297_v49 = vmul.f32 %v489_v39, %v469_v38 }
  0xeb   :  { %v280_v42 = vpop.f32.mrf.mxu1 }
  0xec   :  { %v470_v43 = vpop.f32.mrf.mxu0  ;;  %v295_v46 = vmul.f32 %v280_v42, %v154_v40  ;;  %v325_v56 = vmul.f32 %v316_v44, %v297_v49 }
  0xed   :  { %v490_v45 = vpop.f32.mrf.mxu1 }
  0xee   :  { %v157_v47 = vpop.f32.mrf.mxu0  ;;  %v323_v52 = vmul.f32 %v306_v41, %v295_v46  ;;  %v298_v53 = vmul.f32 %v490_v45, %v470_v43 }
  0xef   :  { %v283_v48 = vpop.f32.mrf.mxu1 }
  0xf0   :  { %v296_v50 = vmul.f32 %v283_v48, %v157_v47  ;;  %v326_v58 = vmul.f32 %v321_v55, %v298_v53 }
  0xf2   :  { %v324_v54 = vmul.f32 %v311_v51, %v296_v50 }
  0xf4   :  { %v327_v57 = vadd.f32 %v324_v54, %v323_v52 }
  0xf6   :  { %v328_v59 = vadd.f32 %v327_v57, %v325_v56 }
  0xf8   :  { %v329_v60 = vadd.f32 %v328_v59, %v326_v58 }
  0xfa   :  { %v330_v61 = vrot.slane %v329_v60, 4 }
  0xfc   :  { %v331_v62 = vadd.f32 %v330_v61, %v329_v60 }
  0xfe   :  { %v332_v63 = vrot.slane %v331_v62, 2 }
 0x100   :  { %v333_v0 = vadd.f32 %v332_v63, %v331_v62 }
 0x102   :  { %v334_v1 = vrot.slane %v333_v0, 1 }
 0x104   :  { %v335_v3 = vadd.f32 %v334_v1, %v333_v0 }
 0x106   :  { %v338_v4 = vadd.f32 %v337_v2, %v335_v3 }
 0x108   :  { %v430_v5 = vmul.f32 -1.442695, %v338_v4 }
 0x10a   :  { %500 = vpow2.f32 %v430_v5 }
 0x117   :  { %v501_v6 = vpop.eup %500 }
 0x118   :  { %v342_v7 = vadd.f32 1.0, %v501_v6 }
 0x11a   :  { %502 = vrcp.f32 %v342_v7 }
 0x127   :  { %v503_v8 = vpop.eup %502 }
 0x128   :  { %345 = vst [vmem:[#allocation3] sm:$0x1] %v503_v8 }
 0x129   :  { %515 = shalt.err (!%p512_p4)
}
 0x12a   :  { %355 = dma.vmem_to_hbm [thread:$0]  %s353_s15, 16, %s773_s6, [#allocation4]  }
 0x12b   :  { %524 = dma.done.wait [#allocation4], 16  }
 0x12c   :  { %525 = vsyncadd [#allocation4], 4294967280 }
 0x12d   :  { %359 = vsyncpa [#allocation4], 1 }

</bundles_post_ra>
